<compile_context>
chip_gen: v7x
topology: tpu7x:2x2x1
jax: 0.10.0
libtpu: 0.0.40
codegen_flags: <defaults>
</compile_context>

<pallas_src>
import jax
import jax.numpy as jnp
from jax import lax
from jax.experimental import pallas as pl
from jax.experimental.pallas import tpu as pltpu


def _round_up(n, m):
    return ((n + m - 1) // m) * m


def mlp_kernel(x_ref, w1_ref, b1_ref, w2_ref, b2_ref, w3_ref, b3_ref,
               w5_ref, b5_ref, o_ref):
    """One batch tile; activations live as (features, tb), tb on the lane axis."""
    dt = w1_ref.dtype                              # compute dtype (bf16 / f32)
    xt = x_ref[...].astype(dt)                     # (tb, in) -- natural layout
    # linear1 + relu:  contract in_dim of w1 (64, in) with in_dim of x (tb, in)
    # -> (64, tb); no materialized transpose, Mosaic handles the rhs-transposed
    # matmul (same pattern as the ubiquitous x @ w.T).
    h = lax.dot_general(w1_ref[...], xt,
                        dimension_numbers=(((1,), (1,)), ((), ())),
                        preferred_element_type=jnp.float32)
    h = jnp.maximum(h + b1_ref[...], 0.0).astype(dt)
    # linear2 + relu:  (32, 64) x (64, tb) -> (32, tb)
    h = jnp.dot(w2_ref[...], h, preferred_element_type=jnp.float32)
    h = jnp.maximum(h + b2_ref[...], 0.0).astype(dt)
    # linear3 + relu:  (16, 32) x (32, tb) -> (16, tb)
    h = jnp.dot(w3_ref[...], h, preferred_element_type=jnp.float32)
    h = jnp.maximum(h + b3_ref[...], 0.0).astype(dt)
    # linear5 head:    (8, 16) x (16, tb) -> (8, tb); rows padded to a full
    # sublane group so the writeback is unmasked full-vreg stores.
    o = jnp.dot(w5_ref[...], h, preferred_element_type=jnp.float32)
    o_ref[...] = o + b5_ref[...]


def mlp_forward(x, params, *, block_batch=8192, compute_dtype=jnp.bfloat16):
    """Fused 4-layer MLP, tiled & pipelined over the batch dimension."""
    w1, b1, w2, b2, w3, b3, w5, b5 = params
    batch, in_dim = x.shape
    out_dim = w5.shape[0]
    out_pad = _round_up(out_dim, 8)

    # Batch tile: lane-dense multiple of 128, large enough to amortize the
    # per-step fixed cost, capped so (a) it never exceeds the batch and
    # (b) the grid has >= 2 steps when possible (v7x megacore).
    tb = max(128, min(_round_up(block_batch, 128),
                      _round_up(pl.cdiv(batch, 2), 128),
                      _round_up(batch, 128)))
    grid = (pl.cdiv(batch, tb),)

    # Weights cast once (tiny, VMEM-resident); biases stay f32 and add into the
    # f32 accumulator.  Head padded to 8 output rows with zeros.
    weights = [w1.astype(compute_dtype), w2.astype(compute_dtype),
               w3.astype(compute_dtype)]
    w5p = jnp.zeros((out_pad, w5.shape[1]), compute_dtype)
    w5p = w5p.at[:out_dim].set(w5.astype(compute_dtype))
    weights.append(w5p)
    biases = [b1.reshape(-1, 1).astype(jnp.float32),
              b2.reshape(-1, 1).astype(jnp.float32),
              b3.reshape(-1, 1).astype(jnp.float32)]
    b5p = jnp.zeros((out_pad, 1), jnp.float32)
    b5p = b5p.at[:out_dim, 0].set(b5.astype(jnp.float32))
    biases.append(b5p)

    def resident(a):
        # Constant block index -> stays VMEM-resident, no per-step re-DMA.
        return pl.BlockSpec(a.shape, lambda i: (0, 0))

    # x streams in its natural (batch, in_dim) layout; ragged last tile handled
    # by Pallas (partial DMA in, partial writeback out).
    in_specs = [pl.BlockSpec((tb, in_dim), lambda i: (i, 0))]
    operands = [x]
    for w, b in zip(weights, biases):
        in_specs += [resident(w), resident(b)]
        operands += [w, b]

    flops = int(2 * batch * (in_dim * 64 + 64 * 32 + 32 * 16 + 16 * out_pad))
    bytes_accessed = int(
        x.size * x.dtype.itemsize
        + batch * out_pad * 4
        + sum(int(w.size) * w.dtype.itemsize for w in weights)
        + sum(int(b.size) * 4 for b in biases))

    out_t = pl.pallas_call(
        mlp_kernel,
        grid=grid,
        in_specs=in_specs,
        out_specs=pl.BlockSpec((out_pad, tb), lambda i: (0, i)),
        out_shape=jax.ShapeDtypeStruct((out_pad, batch), jnp.float32),
        compiler_params=pltpu.CompilerParams(
            dimension_semantics=("parallel",),      # batch tiles independent
            vmem_limit_bytes=32 * 1024 * 1024),     # headroom incl. v5e default
        cost_estimate=pl.CostEstimate(
            flops=flops, transcendentals=0, bytes_accessed=bytes_accessed),
    )(*operands)

    return out_t[:out_dim, :].T


def init_params(key, input_dim, output_dim):
    """PyTorch-style uniform(+-1/sqrt(fan_in)) init; weights are (out, in)."""
    dims = [(input_dim, 64), (64, 32), (32, 16), (16, output_dim)]
    params = []
    for fan_in, fan_out in dims:
        key, kw, kb = jax.random.split(key, 3)
        bound = 1.0 / jnp.sqrt(float(fan_in))
        w = jax.random.uniform(kw, (fan_out, fan_in), jnp.float32, -bound, bound)
        b = jax.random.uniform(kb, (fan_out,), jnp.float32, -bound, bound)
        params.extend([w, b])
    return params


def mlp_reference(x, params):
    w1, b1, w2, b2, w3, b3, w5, b5 = params
    h = jnp.maximum(x @ w1.T + b1, 0.0)
    h = jnp.maximum(h @ w2.T + b2, 0.0)
    h = jnp.maximum(h @ w3.T + b3, 0.0)
    return h @ w5.T + b5


if __name__ == "__main__":
    key = jax.random.PRNGKey(0)
    input_dim = 8      # California housing has 8 features
    output_dim = 1     # regression target

    key, kp = jax.random.split(key)
    params = init_params(kp, input_dim, output_dim)

    # Small ragged single-tile batch, f32 path (tight tolerance).
    key, kx = jax.random.split(key)
    x_small = jax.random.normal(kx, (16, input_dim), jnp.float32)
    out = jax.block_until_ready(
        mlp_forward(x_small, params, compute_dtype=jnp.float32))
    ref = mlp_reference(x_small, params)
    assert out.shape == (16, output_dim)
    assert jnp.allclose(out, ref, atol=1e-5, rtol=1e-5)

    # Multi-tile grid path (two tiles, ragged last tile), f32.
    key, kx2 = jax.random.split(key)
    x_big = jax.random.normal(kx2, (300, input_dim), jnp.float32)
    ref_big = mlp_reference(x_big, params)
    out_f32 = jax.block_until_ready(
        mlp_forward(x_big, params, compute_dtype=jnp.float32))
    assert out_f32.shape == (300, output_dim)
    assert jnp.allclose(out_f32, ref_big, atol=1e-5, rtol=1e-5)

    # Default path: bf16 operands / weights, f32 accumulation + f32 biases.
    out_bf16 = jax.block_until_ready(mlp_forward(x_big, params))
    assert out_bf16.shape == (300, output_dim)
    assert jnp.allclose(out_bf16, ref_big, atol=5e-2, rtol=5e-2)

    print("KERNEL_OK")
</pallas_src>

<mosaic_0001>
module attributes {stable_mosaic.version = 11 : i64} {
  func.func @mlp_kernel(%arg0: i32, %arg1: memref<128x8xf32, #tpu.memory_space<vmem>>, %arg2: memref<64x8xf32, #tpu.memory_space<vmem>>, %arg3: memref<64x1xf32, #tpu.memory_space<vmem>>, %arg4: memref<32x64xf32, #tpu.memory_space<vmem>>, %arg5: memref<32x1xf32, #tpu.memory_space<vmem>>, %arg6: memref<16x32xf32, #tpu.memory_space<vmem>>, %arg7: memref<16x1xf32, #tpu.memory_space<vmem>>, %arg8: memref<8x16xf32, #tpu.memory_space<vmem>>, %arg9: memref<8x1xf32, #tpu.memory_space<vmem>>, %arg10: memref<8x128xf32, #tpu.memory_space<vmem>>) attributes {dimension_semantics = [#tpu.dimension_semantics<parallel>], iteration_bounds = array<i64: 1>, scalar_prefetch = 0 : i64, scratch_operands = 0 : i64, tpu.core_type = #tpu.core_type<tc>, window_params = [{transform_indices = @transform_0, window_bounds = array<i64: 128, 8>}, {pipeline_mode = #tpu.pipeline_mode<synchronous>, transform_indices = @transform_1, window_bounds = array<i64: 64, 8>}, {pipeline_mode = #tpu.pipeline_mode<synchronous>, transform_indices = @transform_2, window_bounds = array<i64: 64, 1>}, {pipeline_mode = #tpu.pipeline_mode<synchronous>, transform_indices = @transform_3, window_bounds = array<i64: 32, 64>}, {pipeline_mode = #tpu.pipeline_mode<synchronous>, transform_indices = @transform_4, window_bounds = array<i64: 32, 1>}, {pipeline_mode = #tpu.pipeline_mode<synchronous>, transform_indices = @transform_5, window_bounds = array<i64: 16, 32>}, {pipeline_mode = #tpu.pipeline_mode<synchronous>, transform_indices = @transform_6, window_bounds = array<i64: 16, 1>}, {pipeline_mode = #tpu.pipeline_mode<synchronous>, transform_indices = @transform_7, window_bounds = array<i64: 8, 16>}, {pipeline_mode = #tpu.pipeline_mode<synchronous>, transform_indices = @transform_8, window_bounds = array<i64: 8, 1>}, {transform_indices = @transform_9, window_bounds = array<i64: 8, 128>}]} {
    %c0 = arith.constant 0 : index
    %c0_0 = arith.constant 0 : index
    %0 = vector.load %arg1[%c0, %c0_0] : memref<128x8xf32, #tpu.memory_space<vmem>>, vector<128x8xf32>
    %c0_1 = arith.constant 0 : index
    %c0_2 = arith.constant 0 : index
    %1 = vector.load %arg2[%c0_1, %c0_2] : memref<64x8xf32, #tpu.memory_space<vmem>>, vector<64x8xf32>
    %cst = arith.constant dense<0.000000e+00> : vector<64x128xf32>
    %2 = tpu.matmul %1, %0, %cst {dimension_numbers = #tpu.dot_dimension_numbers<[1], [1], [0], [0], [0, 0, 1, 0], [], []>} : vector<64x8xf32>, vector<128x8xf32>, vector<64x128xf32> -> vector<64x128xf32>
    %c0_3 = arith.constant 0 : index
    %c0_4 = arith.constant 0 : index
    %3 = vector.load %arg3[%c0_3, %c0_4] : memref<64x1xf32, #tpu.memory_space<vmem>>, vector<64x1xf32>
    %4 = vector.broadcast %3 : vector<64x1xf32> to vector<64x128xf32>
    %5 = arith.addf %2, %4 : vector<64x128xf32>
    %cst_5 = arith.constant 0.000000e+00 : f32
    %6 = vector.broadcast %cst_5 : f32 to vector<64x128xf32>
    %7 = arith.maximumf %5, %6 : vector<64x128xf32>
    %c0_6 = arith.constant 0 : index
    %c0_7 = arith.constant 0 : index
    %8 = vector.load %arg4[%c0_6, %c0_7] : memref<32x64xf32, #tpu.memory_space<vmem>>, vector<32x64xf32>
    %cst_8 = arith.constant dense<0.000000e+00> : vector<32x128xf32>
    %9 = tpu.matmul %8, %7, %cst_8 {dimension_numbers = #tpu.dot_dimension_numbers<[1], [0], [0], [1], [0, 0, 1, 1], [], []>} : vector<32x64xf32>, vector<64x128xf32>, vector<32x128xf32> -> vector<32x128xf32>
    %c0_9 = arith.constant 0 : index
    %c0_10 = arith.constant 0 : index
    %10 = vector.load %arg5[%c0_9, %c0_10] : memref<32x1xf32, #tpu.memory_space<vmem>>, vector<32x1xf32>
    %11 = vector.broadcast %10 : vector<32x1xf32> to vector<32x128xf32>
    %12 = arith.addf %9, %11 : vector<32x128xf32>
    %cst_11 = arith.constant 0.000000e+00 : f32
    %13 = vector.broadcast %cst_11 : f32 to vector<32x128xf32>
    %14 = arith.maximumf %12, %13 : vector<32x128xf32>
    %c0_12 = arith.constant 0 : index
    %c0_13 = arith.constant 0 : index
    %15 = vector.load %arg6[%c0_12, %c0_13] : memref<16x32xf32, #tpu.memory_space<vmem>>, vector<16x32xf32>
    %cst_14 = arith.constant dense<0.000000e+00> : vector<16x128xf32>
    %16 = tpu.matmul %15, %14, %cst_14 {dimension_numbers = #tpu.dot_dimension_numbers<[1], [0], [0], [1], [0, 0, 1, 1], [], []>} : vector<16x32xf32>, vector<32x128xf32>, vector<16x128xf32> -> vector<16x128xf32>
    %c0_15 = arith.constant 0 : index
    %c0_16 = arith.constant 0 : index
    %17 = vector.load %arg7[%c0_15, %c0_16] : memref<16x1xf32, #tpu.memory_space<vmem>>, vector<16x1xf32>
    %18 = vector.broadcast %17 : vector<16x1xf32> to vector<16x128xf32>
    %19 = arith.addf %16, %18 : vector<16x128xf32>
    %cst_17 = arith.constant 0.000000e+00 : f32
    %20 = vector.broadcast %cst_17 : f32 to vector<16x128xf32>
    %21 = arith.maximumf %19, %20 : vector<16x128xf32>
    %c0_18 = arith.constant 0 : index
    %c0_19 = arith.constant 0 : index
    %22 = vector.load %arg8[%c0_18, %c0_19] : memref<8x16xf32, #tpu.memory_space<vmem>>, vector<8x16xf32>
    %cst_20 = arith.constant dense<0.000000e+00> : vector<8x128xf32>
    %23 = tpu.matmul %22, %21, %cst_20 {dimension_numbers = #tpu.dot_dimension_numbers<[1], [0], [0], [1], [0, 0, 1, 1], [], []>} : vector<8x16xf32>, vector<16x128xf32>, vector<8x128xf32> -> vector<8x128xf32>
    %c0_21 = arith.constant 0 : index
    %c0_22 = arith.constant 0 : index
    %24 = vector.load %arg9[%c0_21, %c0_22] : memref<8x1xf32, #tpu.memory_space<vmem>>, vector<8x1xf32>
    %25 = vector.broadcast %24 : vector<8x1xf32> to vector<8x128xf32>
    %26 = arith.addf %23, %25 : vector<8x128xf32>
    %c0_23 = arith.constant 0 : index
    %c0_24 = arith.constant 0 : index
    %27 = vector.load %arg10[%c0_23, %c0_24] : memref<8x128xf32, #tpu.memory_space<vmem>>, vector<8x128xf32>
    tpu.vector_store %arg10[%c0_23, %c0_24], %26 {strides = array<i32>} : memref<8x128xf32, #tpu.memory_space<vmem>>, vector<8x128xf32>,
    return
  }
  func.func @transform_0(%arg0: i32) -> (i32, i32) {
    %c0_i32 = arith.constant 0 : i32
    %c0_i32_0 = arith.constant 0 : i32
    return %arg0, %c0_i32 : i32, i32
  }
  func.func @transform_1(%arg0: i32) -> (i32, i32) {
    %c0_i32 = arith.constant 0 : i32
    %c0_i32_0 = arith.constant 0 : i32
    %c0_i32_1 = arith.constant 0 : i32
    return %c0_i32, %c0_i32_0 : i32, i32
  }
  func.func @transform_2(%arg0: i32) -> (i32, i32) {
    %c0_i32 = arith.constant 0 : i32
    %c0_i32_0 = arith.constant 0 : i32
    %c0_i32_1 = arith.constant 0 : i32
    return %c0_i32, %c0_i32_0 : i32, i32
  }
  func.func @transform_3(%arg0: i32) -> (i32, i32) {
    %c0_i32 = arith.constant 0 : i32
    %c0_i32_0 = arith.constant 0 : i32
    %c0_i32_1 = arith.constant 0 : i32
    return %c0_i32, %c0_i32_0 : i32, i32
  }
  func.func @transform_4(%arg0: i32) -> (i32, i32) {
    %c0_i32 = arith.constant 0 : i32
    %c0_i32_0 = arith.constant 0 : i32
    %c0_i32_1 = arith.constant 0 : i32
    return %c0_i32, %c0_i32_0 : i32, i32
  }
  func.func @transform_5(%arg0: i32) -> (i32, i32) {
    %c0_i32 = arith.constant 0 : i32
    %c0_i32_0 = arith.constant 0 : i32
    %c0_i32_1 = arith.constant 0 : i32
    return %c0_i32, %c0_i32_0 : i32, i32
  }
  func.func @transform_6(%arg0: i32) -> (i32, i32) {
    %c0_i32 = arith.constant 0 : i32
    %c0_i32_0 = arith.constant 0 : i32
    %c0_i32_1 = arith.constant 0 : i32
    return %c0_i32, %c0_i32_0 : i32, i32
  }
  func.func @transform_7(%arg0: i32) -> (i32, i32) {
    %c0_i32 = arith.constant 0 : i32
    %c0_i32_0 = arith.constant 0 : i32
    %c0_i32_1 = arith.constant 0 : i32
    return %c0_i32, %c0_i32_0 : i32, i32
  }
  func.func @transform_8(%arg0: i32) -> (i32, i32) {
    %c0_i32 = arith.constant 0 : i32
    %c0_i32_0 = arith.constant 0 : i32
    %c0_i32_1 = arith.constant 0 : i32
    return %c0_i32, %c0_i32_0 : i32, i32
  }
  func.func @transform_9(%arg0: i32) -> (i32, i32) {
    %c0_i32 = arith.constant 0 : i32
    %c0_i32_0 = arith.constant 0 : i32
    return %c0_i32, %arg0 : i32, i32
  }
}

</mosaic_0001>

<bundles_post_ra>
// kernel: tpu_custom_call.1
= control target key start
LH: loop header
LB: loop body
LE: loop exit
PB: predicated region body
PF: predicated region fallthrough
CT: control target
= control target key end

     0   :  { %vm105_vm0 = vcmask 64512   ;;  %v881_v6 = vmov 0   ;;  %s1138_s0 = inlined_call_operand.vmem [shape: f32[16,8], index: 0, kind: input, shape index: {}]   ;;  %s1139_s1 = inlined_call_operand.vmem [shape: f32[64,8], index: 1, kind: input, shape index: {}]   ;;  %s1140_s2 = inlined_call_operand.vmem [shape: f32[64,1], index: 2, kind: input, shape index: {}]   ;;  %s1141_s3 = inlined_call_operand.vmem [shape: f32[32,64], index: 3, kind: input, shape index: {}]   ;;  %s1142_s4 = inlined_call_operand.vmem [shape: f32[32,1], index: 4, kind: input, shape index: {}]   ;;  %s1143_s5 = inlined_call_operand.vmem [shape: f32[16,32], index: 5, kind: input, shape index: {}]   ;;  %s1144_s6 = inlined_call_operand.vmem [shape: f32[16,1], index: 6, kind: input, shape index: {}]   ;;  %s1145_s7 = inlined_call_operand.vmem [shape: f32[8,16], index: 7, kind: input, shape index: {}]   ;;  %s1146_s8 = inlined_call_operand.vmem [shape: f32[8,1], index: 8, kind: input, shape index: {}]   ;;  %s1147_s9 = inlined_call_operand.hbm [shape: f32[8,16], index: 9, kind: output, shape index: {}]  }
   0x1   :  { %v33_v0 = vld [vmem:[%s1138_s0] sm:$0xff]  ;;  %v34_v1 = vld [vmem:[%s1138_s0 + $0x8] sm:$0xff]  ;;  %v35_v2 = vld [vmem:[%s1138_s0 + $0x10] sm:$0xff]  ;;  %855 = vset.pattern.permute.xlu0 %v881_v6  ;;  %856 = vset.pattern.permute.xlu1 %v881_v6 }
   0x2   :  { %v775_v3 = vpack.c.bf16 %v34_v1, %v33_v0  ;;  %vm947_vm1 = vmpackc.low %vm105_vm0, %vm105_vm0  ;;  %v36_v5 = vld [vmem:[%s1138_s0 + $0x18] sm:$0xff]  ;;  %v49_v8 = vld [vmem:[%s1139_s1] sm:$0xff] }
   0x3   :  { %v781_v7 = vpack.c.bf16 %v36_v5, %v35_v2  ;;  %v37_v9 = vld [vmem:[%s1138_s0 + $0x20] sm:$0xff]  ;;  %v38_v10 = vld [vmem:[%s1138_s0 + $0x28] sm:$0xff]  ;;  %723 = vmatprep.mubr.msk.f32.mxu0 %vm105_vm0, %v49_v8  ;;  %v59_v13 = vld [vmem:[%s1140_s2 + $0x10] sm:$0xff] }
   0x4   :  { %777 = vmatprep.subr.msk.bf16.mxu0 %vm947_vm1, %v775_v3  ;;  %v57_v11 = vld [vmem:[%s1140_s2] sm:$0xff]  ;;  %v787_v12 = vpack.c.bf16 %v38_v10, %v37_v9  ;;  %v58_v14 = vld [vmem:[%s1140_s2 + $0x8] sm:$0xff]  ;;  %77 = vperm.xlu1 %856, %v59_v13   ;;  %v60_v15 = vld [vmem:[%s1140_s2 + $0x18] sm:$0xff] }
   0x5   :  { %780 = vmatpush3.bf16.xpose.msk.msra.mxu0 %vm947_vm1, %v775_v3  ;;  %67 = vperm.xlu0 %855, %v57_v11  }
   0x6   :  { %783 = vmatprep.subr.msk.bf16.mxu0 %vm947_vm1, %v781_v7 }
   0x9   :  { %72 = vperm.xlu0 %855, %v58_v14  }
   0xd   :  { %786 = vmatpush3.bf16.xpose.msk.msra.mxu0 %vm947_vm1, %v781_v7 }
   0xe   :  { %789 = vmatprep.subr.msk.bf16.mxu0 %vm947_vm1, %v787_v12 }
   0xf   :  { %14 = vsyncpa [#allocation3], 0  ;;  %v39_v16 = vld [vmem:[%s1138_s0 + $0x30] sm:$0xff]  ;;  %v40_v17 = vld [vmem:[%s1138_s0 + $0x38] sm:$0xff]  ;;  %82 = vperm.xlu1 %856, %v60_v15   ;;  %vm319_vm2 = vcmask 523264   ;;  %vm435_vm3 = vcmask 261120  }
  0x10   :  { %v61_v18 = vld [vmem:[%s1140_s2 + $0x20] sm:$0xff]  ;;  %v62_v19 = vld [vmem:[%s1140_s2 + $0x28] sm:$0xff]  ;;  %v793_v20 = vpack.c.bf16 %v40_v17, %v39_v16  ;;  %v63_v21 = vld [vmem:[%s1140_s2 + $0x30] sm:$0xff]  ;;  %vm883_vm4 = vmmov 0   ;;  %vm526_vm5 = vcmask 130048  }
  0x11   :  { %87 = vperm.xlu0 %855, %v61_v18   ;;  %v64_v22 = vld [vmem:[%s1140_s2 + $0x38] sm:$0xff]  ;;  %v41_v23 = vld [vmem:[%s1138_s0 + $0x40] sm:$0xff]  ;;  %v42_v24 = vld [vmem:[%s1138_s0 + $0x48] sm:$0xff] }
  0x12   :  { %v295_v25 = vld [vmem:[%s1142_s4] sm:$0xff]  ;;  %v296_v26 = vld [vmem:[%s1142_s4 + $0x8] sm:$0xff]  ;;  %v799_v27 = vpack.c.bf16 %v42_v24, %v41_v23  ;;  %v297_v28 = vld [vmem:[%s1142_s4 + $0x10] sm:$0xff] }
  0x13   :  { %92 = vperm.xlu1 %856, %v62_v19   ;;  %v298_v29 = vld [vmem:[%s1142_s4 + $0x18] sm:$0xff]  ;;  %v43_v30 = vld [vmem:[%s1138_s0 + $0x50] sm:$0xff]  ;;  %v423_v32 = vld [vmem:[%s1144_s6] sm:$0xff] }
  0x14   :  { %v44_v31 = vld [vmem:[%s1138_s0 + $0x58] sm:$0xff]  ;;  %v424_v33 = vld [vmem:[%s1144_s6 + $0x8] sm:$0xff]  ;;  %v520_v35 = vld [vmem:[%s1146_s8] sm:$0xff] }
  0x15   :  { %792 = vmatpush3.bf16.xpose.msk.msra.mxu0 %vm947_vm1, %v787_v12  ;;  %97 = vperm.xlu0 %855, %v63_v21   ;;  %v805_v34 = vpack.c.bf16 %v44_v31, %v43_v30  ;;  %v45_v36 = vld [vmem:[%s1138_s0 + $0x60] sm:$0xff]  ;;  %v46_v37 = vld [vmem:[%s1138_s0 + $0x68] sm:$0xff]  ;;  %v47_v39 = vld [vmem:[%s1138_s0 + $0x70] sm:$0xff] }
  0x16   :  { %795 = vmatprep.subr.msk.bf16.mxu0 %vm947_vm1, %v793_v20  ;;  %v811_v38 = vpack.c.bf16 %v46_v37, %v45_v36  ;;  %v48_v40 = vld [vmem:[%s1138_s0 + $0x78] sm:$0xff]  ;;  %v50_v42 = vld [vmem:[%s1139_s1 + $0x8] sm:$0xff]  ;;  %v51_v43 = vld [vmem:[%s1139_s1 + $0x10] sm:$0xff] }
  0x17   :  { %102 = vperm.xlu1 %856, %v64_v22   ;;  %v817_v41 = vpack.c.bf16 %v48_v40, %v47_v39  ;;  %v52_v44 = vld [vmem:[%s1139_s1 + $0x18] sm:$0xff]  ;;  %v53_v45 = vld [vmem:[%s1139_s1 + $0x20] sm:$0xff]  ;;  %v54_v46 = vld [vmem:[%s1139_s1 + $0x28] sm:$0xff] }
  0x18   :  { %v55_v47 = vld [vmem:[%s1139_s1 + $0x30] sm:$0xff]  ;;  %v56_v48 = vld [vmem:[%s1139_s1 + $0x38] sm:$0xff]  ;;  %v291_v49 = vld [vmem:[%s1141_s3] sm:$0xff] }
  0x19   :  { %301 = vperm.xlu0 %855, %v295_v25   ;;  %751 = vmatprep.mubr.msk.f32.mxu1 %vm319_vm2, %v291_v49  ;;  %v292_v22 = vld [vmem:[%s1141_s3 + $0x8] sm:$0xff]  ;;  %v293_v23 = vld [vmem:[%s1141_s3 + $0x10] sm:$0xff]  ;;  %v294_v24 = vld [vmem:[%s1141_s3 + $0x18] sm:$0xff] }
  0x1a   :  { %v421_v25 = vld [vmem:[%s1143_s5] sm:$0xff] }
  0x1b   :  { %306 = vperm.xlu1 %856, %v296_v26  }
  0x1d   :  { %798 = vmatpush3.bf16.xpose.msk.msra.mxu0 %vm947_vm1, %v793_v20  ;;  %311 = vperm.xlu0 %855, %v297_v28  }
  0x1e   :  { %801 = vmatprep.subr.msk.bf16.mxu0 %vm947_vm1, %v799_v27 }
  0x1f   :  { %316 = vperm.xlu1 %856, %v298_v29  }
  0x21   :  { %427 = vperm.xlu0 %855, %v423_v32  }
  0x23   :  { %432 = vperm.xlu1 %856, %v424_v33  }
  0x25   :  { %804 = vmatpush3.bf16.xpose.msk.msra.mxu0 %vm947_vm1, %v799_v27  ;;  %523 = vperm.xlu0 %855, %v520_v35  }
  0x26   :  { %807 = vmatprep.subr.msk.bf16.mxu0 %vm947_vm1, %v805_v34 }
  0x2d   :  { %810 = vmatpush3.bf16.xpose.msk.msra.mxu0 %vm947_vm1, %v805_v34 }
  0x2e   :  { %813 = vmatprep.subr.msk.bf16.mxu0 %vm947_vm1, %v811_v38 }
  0x35   :  { %816 = vmatpush3.bf16.xpose.msk.msra.mxu0 %vm947_vm1, %v811_v38 }
  0x36   :  { %819 = vmatprep.subr.msk.bf16.mxu0 %vm947_vm1, %v817_v41 }
  0x3d   :  { %822 = vmatpush3.bf16.xpose.msk.msra.mxu0 %vm947_vm1, %v817_v41 }
  0x44   :  { %724 = vmatmul.mubr.msk.f32.vlgmr.msra.gmra.mrb[0].mxu0 %vm105_vm0, %v50_v42 }
  0x45   :  { %726 = vmatprep.mubr.msk.f32.mxu0 %vm105_vm0, %v51_v43 }
  0x48   :  { %727 = vmatmul.mubr.msk.f32.gmra.mrb[2].mxu0 %vm105_vm0, %v52_v44  ;;  %v422_v44 = vld [vmem:[%s1143_s5 + $0x8] sm:$0xff]  ;;  %s885_s5 = smov [#allocation2]  }
  0x49   :  { %729 = vmatprep.mubr.msk.f32.mxu0 %vm105_vm0, %v53_v45  ;;  %v882_v45 = vmov 0.0|0.0   ;;  %s607_s27 = sshll.u32 %s885_s5, 4  ;;  %s608_s27 = int_to_ptr.vmem [resolvable:$true] %s607_s27 }
  0x4a   :  { %s857_s2 = scalar_lea.vmem %s608_s27, 128  ;;  %p862_p1 = scmp.lt.s32.totalorder %s608_s27, %s608_s27 }
  0x4b   :  { %p858_p0 = scmp.ne.s32.totalorder %s608_s27, %s857_s2  ;;  %p863_p2 = scmp.lt.s32.totalorder %s857_s2, %s857_s2 }
  0x4c   :  { %730 = vmatmul.mubr.msk.f32.gmra.mrb[4].mxu0 %vm105_vm0, %v54_v46  ;;  %v884_v46 = vmov 0.0  }
  0x4d   :  { %732 = vmatprep.mubr.msk.f32.mxu0 %vm105_vm0, %v55_v47  ;;  %p864_p3 = por %p863_p2, %p862_p1 }
  0x4f   :  { %p865_p4 = pnand %p864_p3, %p858_p0 }
  0x50   :  { %733 = vmatmul.mubr.msk.f32.gmra.mrb[6].mxu0 %vm105_vm0, %v56_v48 }
  0x83   :  { %v78_v51 = vpop.permute.xlu1 %77 }
  0x84   :  { %v68_v50 = vpop.permute.xlu0 %67 }
  0x88   :  { %v73_v52 = vpop.permute.xlu0 %72 }
  0x8e   :  { %v83_v53 = vpop.permute.xlu1 %82 }
  0x90   :  { %v88_v2 = vpop.permute.xlu0 %87 }
  0x92   :  { %v93_v63 = vpop.permute.xlu1 %92 }
  0x94   :  { %v98_v14 = vpop.permute.xlu0 %97 }
  0x96   :  { %v103_v11 = vpop.permute.xlu1 %102 }
  0x98   :  { %v302_v27 = vpop.permute.xlu0 %301 }
  0x9a   :  { %v307_v26 = vpop.permute.xlu1 %306 }
  0x9c   :  { %v312_v36 = vpop.permute.xlu0 %311 }
  0x9e   :  { %v317_v33 = vpop.permute.xlu1 %316 }
  0xa0   :  { %v428_v49 = vpop.permute.xlu0 %427 }
  0xa2   :  { %v433_v47 = vpop.permute.xlu1 %432 }
 0x117   :  { %v725_v54 = vpop.f32.mrb[0].mxu0 }
 0x118   :  { %v250_v55 = vadd.f32 %v725_v54, %v73_v52  ;;  %v244_v56 = vpop.f32.mrb[1].mxu0 }
 0x119   :  { %v245_v57 = vadd.f32 %v244_v56, %v68_v50  ;;  %v519_v56 = vld [vmem:[%s1145_s7] sm:$0xff] }
 0x11a   :  { %v284_v58 = vmax.f32 %v250_v55, 0.0 }
 0x11b   :  { %v283_v59 = vmax.f32 %v245_v57, 0.0  ;;  %v728_v60 = vpop.f32.mrb[2].mxu0  ;;  %v524_v57 = vpop.permute.xlu0 %523 }
 0x11c   :  { %v260_v61 = vadd.f32 %v728_v60, %v83_v53  ;;  %v254_v62 = vpop.f32.mrb[3].mxu0 }
 0x11d   :  { %v255_v0 = vadd.f32 %v254_v62, %v78_v51  ;;  %v823_v1 = vpack.c.bf16 %v284_v58, %v283_v59 }
 0x11e   :  { %v286_v3 = vmax.f32 %v260_v61, 0.0 }
 0x11f   :  { %v285_v4 = vmax.f32 %v255_v0, 0.0  ;;  %v731_v5 = vpop.f32.mrb[4].mxu0  ;;  %824 = vmatprep.subr.bf16.mxu1 %v823_v1 }
 0x120   :  { %v270_v6 = vadd.f32 %v731_v5, %v93_v63  ;;  %v264_v7 = vpop.f32.mrb[5].mxu0  ;;  %826 = vmatpush3.bf16.msra.mxu1 %v823_v1 }
 0x121   :  { %v827_v8 = vpack.c.bf16 %v286_v3, %v285_v4  ;;  %v265_v9 = vadd.f32 %v264_v7, %v88_v2 }
 0x122   :  { %v288_v10 = vmax.f32 %v270_v6, 0.0 }
 0x123   :  { %v287_v12 = vmax.f32 %v265_v9, 0.0  ;;  %v734_v13 = vpop.f32.mrb[6].mxu0  ;;  %828 = vmatprep.subr.bf16.mxu1 %v827_v8 }
 0x124   :  { %v280_v15 = vadd.f32 %v734_v13, %v103_v11  ;;  %v274_v16 = vpop.f32.mrb[7].mxu0  ;;  %830 = vmatpush3.bf16.msra.mxu1 %v827_v8 }
 0x125   :  { %v831_v17 = vpack.c.bf16 %v288_v10, %v287_v12  ;;  %v275_v18 = vadd.f32 %v274_v16, %v98_v14 }
 0x126   :  { %v290_v19 = vmax.f32 %v280_v15, 0.0 }
 0x127   :  { %v289_v20 = vmax.f32 %v275_v18, 0.0  ;;  %832 = vmatprep.subr.bf16.mxu1 %v831_v17 }
 0x128   :  { %834 = vmatpush3.bf16.msra.mxu1 %v831_v17 }
 0x129   :  { %v835_v21 = vpack.c.bf16 %v290_v19, %v289_v20 }
 0x12b   :  { %836 = vmatprep.subr.bf16.mxu1 %v835_v21 }
 0x12c   :  { %838 = vmatpush3.bf16.msra.mxu1 %v835_v21 }
 0x12f   :  { %752 = vmatmul.mubr.msk.f32.vlgmr.msra.gmra.mrb[0].mxu1 %vm319_vm2, %v292_v22 }
 0x130   :  { %754 = vmatprep.mubr.msk.f32.mxu1 %vm319_vm2, %v293_v23 }
 0x133   :  { %755 = vmatmul.mubr.msk.f32.gmra.mrb[2].mxu1 %vm319_vm2, %v294_v24 }
 0x134   :  { %765 = vmatprep.mubr.msk.f32.mxu1 %vm435_vm3, %v421_v25 }
 0x202   :  { %v753_v28 = vpop.f32.mrb[0].mxu1 }
 0x203   :  { %v404_v29 = vadd.f32 %v753_v28, %v307_v26  ;;  %v398_v30 = vpop.f32.mrb[1].mxu1 }
 0x204   :  { %v399_v31 = vadd.f32 %v398_v30, %v302_v27 }
 0x205   :  { %v418_v32 = vmax.f32 %v404_v29, 0.0 }
 0x206   :  { %v417_v34 = vmax.f32 %v399_v31, 0.0  ;;  %v756_v35 = vpop.f32.mrb[2].mxu1 }
 0x207   :  { %v414_v37 = vadd.f32 %v756_v35, %v317_v33  ;;  %v408_v38 = vpop.f32.mrb[3].mxu1 }
 0x208   :  { %v839_v39 = vpack.c.bf16 %v418_v32, %v417_v34  ;;  %v409_v40 = vadd.f32 %v408_v38, %v312_v36 }
 0x209   :  { %v420_v41 = vmax.f32 %v414_v37, 0.0 }
 0x20a   :  { %v419_v42 = vmax.f32 %v409_v40, 0.0  ;;  %840 = vmatprep.subr.bf16.mxu1 %v839_v39 }
 0x20b   :  { %842 = vmatpush3.bf16.msra.mxu1 %v839_v39 }
 0x20c   :  { %v843_v43 = vpack.c.bf16 %v420_v41, %v419_v42 }
 0x20e   :  { %844 = vmatprep.subr.bf16.mxu1 %v843_v43 }
 0x20f   :  { %846 = vmatpush3.bf16.msra.mxu1 %v843_v43 }
 0x210   :  { %847 = vmatprep.subr.bf16.mxu1 %v882_v45 }
 0x212   :  { %766 = vmatmul.mubr.msk.f32.vlgmr.msra.gmra.mrb[4].mxu1 %vm435_vm3, %v422_v44 }
 0x213   :  { %772 = vmatprep.mubr.msk.f32.mxu1 %vm883_vm4, %v884_v46 }
 0x2e5   :  { %v767_v48 = vpop.f32.mrb[4].mxu1 }
 0x2e6   :  { %v514_v50 = vadd.f32 %v767_v48, %v433_v47  ;;  %v508_v51 = vpop.f32.mrb[5].mxu1 }
 0x2e7   :  { %v509_v52 = vadd.f32 %v508_v51, %v428_v49 }
 0x2e8   :  { %v518_v53 = vmax.f32 %v514_v50, 0.0 }
 0x2e9   :  { %v517_v54 = vmax.f32 %v509_v52, 0.0 }
 0x2eb   :  { %v848_v55 = vpack.c.bf16 %v518_v53, %v517_v54 }
 0x2ed   :  { %849 = vmatpush3.bf16.msra.mxu1 %v848_v55 }
 0x2f0   :  { %773 = vmatmul.mubr.msk.f32.vlgmr.msra.gmra.mrb[6].mxu1 %vm526_vm5, %v519_v56 }
 0x3c3   :  { %v596_v58 = vpop.f32.mrb[6].mxu1 }
 0x3c4   :  { %v597_v59 = vadd.f32 %v596_v58, %v524_v57  ;;  %v774_v60 = vpop.f32.mrb[7].mxu1 }
 0x3c6   :  { %600 = vst [vmem:[#allocation2] sm:$0xff] %v597_v59 }
 0x3c7   :  { %868 = shalt.err (!%p865_p4)
}
 0x3c8   :  { %s869_s7 = scalar_lea.hbm %s1147_s9, 128 }
 0x3c9   :  { %p870_p5 = scmp.ne.s32.totalorder %s1147_s9, %s869_s7  ;;  %p873_p6 = scmp.lt.u32.totalorder %s869_s7, %s1147_s9 }
 0x3cb   :  { %p875_p7 = pnand %p873_p6, %p870_p5 }
 0x3cd   :  { %878 = shalt.err (!%p875_p7)
}
 0x3ce   :  { %610 = dma.vmem_to_hbm [thread:$0]  %s608_s27, 128, %s1147_s9, [#allocation3]  }
 0x3cf   :  { %879 = dma.done.wait [#allocation3], 128  }
 0x3d0   :  { %880 = vsyncadd [#allocation3], 4294967168 }
 0x3d1   :  { %614 = vsyncpa [#allocation3], 1 }

</bundles_post_ra>
